<compile_context>
chip_gen: v7x
topology: tpu7x:2x2x1
jax: 0.10.0
libtpu: 0.0.40
codegen_flags: <defaults>
</compile_context>

<pallas_src>
import functools

import jax
import jax.numpy as jnp
from jax.experimental import pallas as pl
from jax.experimental.pallas import tpu as pltpu


def _round_up(x, m):
    return (x + m - 1) // m * m


def _layernorm_store(y, gamma, beta, o_ref, *, eps, h_real):
    """y: f32 (rows, Hp). Normalize over the real H lanes, write to o_ref."""
    hp = y.shape[-1]
    inv_h = 1.0 / float(h_real)
    mean = jnp.sum(y, axis=-1, keepdims=True) * inv_h
    centered = y - mean
    if hp != h_real:
        # Padded lanes of y are exactly zero; mask them out of the centered
        # second pass so the variance matches a sum over the real width.
        lane = jax.lax.broadcasted_iota(jnp.int32, y.shape, y.ndim - 1)
        centered = jnp.where(lane < h_real, centered, 0.0)
    var = jnp.sum(centered * centered, axis=-1, keepdims=True) * inv_h
    out = centered * jax.lax.rsqrt(var + eps) * gamma + beta
    o_ref[...] = out.astype(o_ref.dtype)


def _self_output_kernel(x_ref, res_ref, w_ref, b_ref, g_ref, beta_ref, o_ref,
                        *, eps, h_real):
    """Resident-weight path: one grid axis over row tiles."""
    # bf16 operands on the MXU, f32 accumulation.
    h = jnp.dot(x_ref[...], w_ref[...], preferred_element_type=jnp.float32)
    # Dropout: identity in eval mode.
    # TODO(synk): training-mode dropout (pltpu.prng_random_bits mask) not wired in.
    y = h + b_ref[...] + res_ref[...].astype(jnp.float32)
    _layernorm_store(y, g_ref[...], beta_ref[...], o_ref, eps=eps, h_real=h_real)


def _self_output_kernel_ktiled(x_ref, res_ref, w_ref, b_ref, g_ref, beta_ref,
                               o_ref, acc_ref, *, eps, h_real):
    """K-tiled path: grid = (row tiles, k tiles), weight streamed in (tk, Hp)."""
    k = pl.program_id(1)

    @pl.when(k == 0)
    def _init():
        acc_ref[...] = jnp.zeros_like(acc_ref)

    acc_ref[...] += jnp.dot(x_ref[...], w_ref[...],
                            preferred_element_type=jnp.float32)

    @pl.when(k == pl.num_programs(1) - 1)
    def _finalize():
        y = acc_ref[...] + b_ref[...] + res_ref[...].astype(jnp.float32)
        _layernorm_store(y, g_ref[...], beta_ref[...], o_ref,
                         eps=eps, h_real=h_real)


def _vmem_budget_bytes():
    # Conservative default = v7x (64 MiB per TensorCore) if the query fails.
    cap = 64 << 20
    try:
        info = pltpu.get_tpu_info()
        cap = int(getattr(info, "vmem_capacity_bytes", cap))
    except Exception:
        pass
    return min(cap - (8 << 20), 100 << 20)


def ilp_transformer_self_output(hidden_states, input_tensor,
                                dense_w, dense_b, ln_gamma, ln_beta,
                                *, eps=1e-12, out_dtype=None):
    """hidden_states, input_tensor: [B, S, H]; dense_w: [H, H] ([in, out]);
    dense_b, ln_gamma, ln_beta: [H].

    Fully traceable — call under jax.jit so the parameter pad / bf16 cast is
    constant-folded / fused instead of re-materialized in HBM per call.
    Pass out_dtype=jnp.bfloat16 to halve the output HBM stream if the consumer
    tolerates bf16.
    """
    B, S, H = hidden_states.shape
    R = B * S
    out_dtype = hidden_states.dtype if out_dtype is None else out_dtype
    out_itemsize = jnp.dtype(out_dtype).itemsize

    # Lane-align the hidden dim only when needed (H % 128 != 0). Rows are never
    # padded: the trailing row block is ragged (grid = cdiv(R, row_tile)).
    Hp = _round_up(H, 128)
    pad_h = Hp - H

    # x stream in bf16 (MXU operand dtype -> half the DMA bytes); residual f32.
    x = hidden_states.reshape(R, H).astype(jnp.bfloat16)
    res = input_tensor.reshape(R, H)
    if pad_h:
        x = jnp.pad(x, ((0, 0), (0, pad_h)))
        res = jnp.pad(res, ((0, 0), (0, pad_h)))

    w = dense_w.astype(jnp.bfloat16)
    if pad_h:
        w = jnp.pad(w, ((0, pad_h), (0, pad_h)))

    def _pad1(p):
        p = p.astype(jnp.float32)
        if pad_h:
            p = jnp.pad(p, (0, pad_h))
        return p.reshape(1, Hp)

    b2, g2, be2 = _pad1(dense_b), _pad1(ln_gamma), _pad1(ln_beta)

    budget = _vmem_budget_bytes()

    # Keep the full (Hp, Hp) bf16 weight resident only while it is cheap; for
    # large H stream it along the contraction dim instead (v7x VMEM = 64 MiB).
    w_resident_bytes = 2 * Hp * Hp * 2          # default double-buffered
    k_tiled = w_resident_bytes > (16 << 20)
    if k_tiled:
        tk = 512 if Hp % 512 == 0 else (256 if Hp % 256 == 0 else 128)
    else:
        tk = Hp

    def _vmem_need(rt):
        if k_tiled:
            return (2 * rt * tk * 2            # x blocks (bf16)
                    + 2 * tk * Hp * 2          # weight blocks (bf16)
                    + 2 * rt * Hp * 4          # residual blocks (f32)
                    + 2 * rt * Hp * out_itemsize
                    + rt * Hp * 4              # f32 accumulator scratch
                    + 3 * 2 * Hp * 4)          # bias / gamma / beta
        return (2 * rt * Hp * 2                # x blocks (bf16)
                + w_resident_bytes
                + 2 * rt * Hp * 4              # residual blocks (f32)
                + 2 * rt * Hp * out_itemsize
                + 3 * 2 * Hp * 4)

    # Row tile: large (512) to amortize per-step overhead, but keep >= 2 grid
    # steps so megacore (v7x 2 TCs) has work to split, and stay within VMEM.
    if R < 8:
        row_tile = R                           # block dim == full dim (allowed)
    elif R == 8:
        row_tile = 8
    else:
        row_tile = min(512, _round_up(pl.cdiv(R, 2), 8))
    while row_tile > 8 and _vmem_need(row_tile) > budget:
        row_tile = max(8, _round_up(row_tile // 2, 8))

    grid_rows = pl.cdiv(R, row_tile)
    vmem_limit = int(min(budget, max(2 * _vmem_need(row_tile) + (1 << 20),
                                     16 << 20)))

    cost = pl.CostEstimate(
        flops=2 * R * Hp * Hp,
        transcendentals=0,
        bytes_accessed=(R * Hp * (2 + 4 + out_itemsize)
                        + Hp * Hp * 2 + 3 * Hp * 4))

    if k_tiled:
        nk = Hp // tk
        grid = (grid_rows, nk)
        in_specs = [
            pl.BlockSpec((row_tile, tk), lambda i, k: (i, k)),    # x
            pl.BlockSpec((row_tile, Hp), lambda i, k: (i, 0)),    # residual
            pl.BlockSpec((tk, Hp), lambda i, k: (k, 0)),          # weight
            pl.BlockSpec((1, Hp), lambda i, k: (0, 0)),           # bias
            pl.BlockSpec((1, Hp), lambda i, k: (0, 0)),           # gamma
            pl.BlockSpec((1, Hp), lambda i, k: (0, 0)),           # beta
        ]
        out_spec = pl.BlockSpec((row_tile, Hp), lambda i, k: (i, 0))
        scratch_shapes = [pltpu.VMEM((row_tile, Hp), jnp.float32)]
        kernel = functools.partial(_self_output_kernel_ktiled,
                                   eps=eps, h_real=H)
        dims = ("parallel", "arbitrary")
    else:
        grid = (grid_rows,)
        in_specs = [
            pl.BlockSpec((row_tile, Hp), lambda i: (i, 0)),       # x
            pl.BlockSpec((row_tile, Hp), lambda i: (i, 0)),       # residual
            pl.BlockSpec((Hp, Hp), lambda i: (0, 0)),             # weight
            pl.BlockSpec((1, Hp), lambda i: (0, 0)),              # bias
            pl.BlockSpec((1, Hp), lambda i: (0, 0)),              # gamma
            pl.BlockSpec((1, Hp), lambda i: (0, 0)),              # beta
        ]
        out_spec = pl.BlockSpec((row_tile, Hp), lambda i: (i, 0))
        scratch_shapes = []
        kernel = functools.partial(_self_output_kernel, eps=eps, h_real=H)
        dims = ("parallel",)

    out = pl.pallas_call(
        kernel,
        out_shape=jax.ShapeDtypeStruct((R, Hp), out_dtype),
        grid_spec=pltpu.PrefetchScalarGridSpec(
            num_scalar_prefetch=0,
            grid=grid,
            in_specs=in_specs,
            out_specs=out_spec,
            scratch_shapes=scratch_shapes),
        compiler_params=pltpu.CompilerParams(
            dimension_semantics=dims,
            vmem_limit_bytes=vmem_limit),
        cost_estimate=cost,
    )(x, res, w, b2, g2, be2)

    if pad_h:
        out = out[:, :H]
    return out.reshape(B, S, H)


def _reference(hidden_states, input_tensor, dense_w, dense_b, ln_gamma,
               ln_beta, eps=1e-12, mxu_bf16=True):
    B, S, H = hidden_states.shape
    x = hidden_states.reshape(-1, H)
    w = dense_w
    if mxu_bf16:   # mirror the kernel's bf16 MXU operands (f32 accumulation)
        x = x.astype(jnp.bfloat16)
        w = w.astype(jnp.bfloat16)
    h = jnp.dot(x, w, preferred_element_type=jnp.float32) + dense_b
    y = h + input_tensor.reshape(-1, H).astype(jnp.float32)
    mean = jnp.mean(y, axis=-1, keepdims=True)
    var = jnp.mean((y - mean) ** 2, axis=-1, keepdims=True)
    out = (y - mean) * jax.lax.rsqrt(var + eps) * ln_gamma + ln_beta
    return out.reshape(B, S, H).astype(hidden_states.dtype)


if __name__ == "__main__":
    B, S, H = 2, 8, 32   # batch=2, seq=8, hidden=32
    eps = 1e-12

    key = jax.random.PRNGKey(0)
    k1, k2, k3, k4 = jax.random.split(key, 4)

    hidden_states = jax.random.normal(k1, (B, S, H), dtype=jnp.float32)
    input_tensor = jax.random.normal(k2, (B, S, H), dtype=jnp.float32)

    # Deterministic parameter init (Linear weight stored as [in, out]).
    bound = 1.0 / float(H) ** 0.5
    dense_w = jax.random.uniform(k3, (H, H), jnp.float32, -bound, bound)
    dense_b = jax.random.uniform(k4, (H,), jnp.float32, -bound, bound)
    ln_gamma = jnp.ones((H,), dtype=jnp.float32)
    ln_beta = jnp.zeros((H,), dtype=jnp.float32)

    fn = jax.jit(functools.partial(ilp_transformer_self_output, eps=eps))
    out = jax.block_until_ready(
        fn(hidden_states, input_tensor, dense_w, dense_b, ln_gamma, ln_beta))

    ref_matched = _reference(hidden_states, input_tensor, dense_w, dense_b,
                             ln_gamma, ln_beta, eps=eps, mxu_bf16=True)
    ref_f32 = _reference(hidden_states, input_tensor, dense_w, dense_b,
                         ln_gamma, ln_beta, eps=eps, mxu_bf16=False)

    assert out.shape == (B, S, H)
    assert jnp.allclose(out, ref_matched, atol=1e-4, rtol=1e-4), \
        "mismatch vs bf16-matmul reference"
    assert jnp.allclose(out, ref_f32, atol=5e-2, rtol=5e-2), \
        "mismatch vs f32 reference (loose sanity check)"

    print("KERNEL_OK")
</pallas_src>

<mosaic_0001>
module attributes {stable_mosaic.version = 11 : i64} {
  func.func @_self_output_kernel(%arg0: i32, %arg1: memref<8x128xbf16, #tpu.memory_space<vmem>>, %arg2: memref<8x128xf32, #tpu.memory_space<vmem>>, %arg3: memref<128x128xbf16, #tpu.memory_space<vmem>>, %arg4: memref<1x128xf32, #tpu.memory_space<vmem>>, %arg5: memref<1x128xf32, #tpu.memory_space<vmem>>, %arg6: memref<1x128xf32, #tpu.memory_space<vmem>>, %arg7: memref<8x128xf32, #tpu.memory_space<vmem>>) attributes {dimension_semantics = [#tpu.dimension_semantics<parallel>], iteration_bounds = array<i64: 2>, scalar_prefetch = 0 : i64, scratch_operands = 0 : i64, tpu.core_type = #tpu.core_type<tc>, window_params = [{transform_indices = @transform_0, window_bounds = array<i64: 8, 128>}, {transform_indices = @transform_1, window_bounds = array<i64: 8, 128>}, {pipeline_mode = #tpu.pipeline_mode<synchronous>, transform_indices = @transform_2, window_bounds = array<i64: 128, 128>}, {pipeline_mode = #tpu.pipeline_mode<synchronous>, transform_indices = @transform_3, window_bounds = array<i64: 1, 128>}, {pipeline_mode = #tpu.pipeline_mode<synchronous>, transform_indices = @transform_4, window_bounds = array<i64: 1, 128>}, {pipeline_mode = #tpu.pipeline_mode<synchronous>, transform_indices = @transform_5, window_bounds = array<i64: 1, 128>}, {transform_indices = @transform_6, window_bounds = array<i64: 8, 128>}]} {
    %c0 = arith.constant 0 : index
    %c0_0 = arith.constant 0 : index
    %0 = vector.load %arg1[%c0, %c0_0] : memref<8x128xbf16, #tpu.memory_space<vmem>>, vector<8x128xbf16>
    %c0_1 = arith.constant 0 : index
    %c0_2 = arith.constant 0 : index
    %1 = vector.load %arg3[%c0_1, %c0_2] : memref<128x128xbf16, #tpu.memory_space<vmem>>, vector<128x128xbf16>
    %cst = arith.constant dense<0.000000e+00> : vector<8x128xf32>
    %2 = tpu.matmul %0, %1, %cst {dimension_numbers = #tpu.dot_dimension_numbers<[1], [0], [0], [1], [0, 0, 1, 1], [], []>} : vector<8x128xbf16>, vector<128x128xbf16>, vector<8x128xf32> -> vector<8x128xf32>
    %c0_3 = arith.constant 0 : index
    %c0_4 = arith.constant 0 : index
    %3 = vector.load %arg4[%c0_3, %c0_4] : memref<1x128xf32, #tpu.memory_space<vmem>>, vector<1x128xf32>
    %4 = vector.broadcast %3 : vector<1x128xf32> to vector<8x128xf32>
    %5 = arith.addf %2, %4 : vector<8x128xf32>
    %c0_5 = arith.constant 0 : index
    %c0_6 = arith.constant 0 : index
    %6 = vector.load %arg2[%c0_5, %c0_6] : memref<8x128xf32, #tpu.memory_space<vmem>>, vector<8x128xf32>
    %7 = arith.addf %5, %6 : vector<8x128xf32>
    %c0_7 = arith.constant 0 : index
    %c0_8 = arith.constant 0 : index
    %8 = vector.load %arg5[%c0_7, %c0_8] : memref<1x128xf32, #tpu.memory_space<vmem>>, vector<1x128xf32>
    %c0_9 = arith.constant 0 : index
    %c0_10 = arith.constant 0 : index
    %9 = vector.load %arg6[%c0_9, %c0_10] : memref<1x128xf32, #tpu.memory_space<vmem>>, vector<1x128xf32>
    %cst_11 = arith.constant dense<0.000000e+00> : vector<8xf32>
    %10 = vector.multi_reduction <add>, %7, %cst_11 [1] : vector<8x128xf32> to vector<8xf32>
    %11 = vector.shape_cast %10 : vector<8xf32> to vector<8x1xf32>
    %cst_12 = arith.constant 3.125000e-02 : f32
    %12 = vector.broadcast %cst_12 : f32 to vector<8x1xf32>
    %13 = arith.mulf %11, %12 : vector<8x1xf32>
    %14 = vector.broadcast %13 : vector<8x1xf32> to vector<8x128xf32>
    %15 = arith.subf %7, %14 : vector<8x128xf32>
    %16 = tpu.iota {dimensions = array<i32: 1>} : vector<8x128xi32>
    %c32_i32 = arith.constant 32 : i32
    %17 = vector.broadcast %c32_i32 : i32 to vector<8x128xi32>
    %18 = arith.cmpi slt, %16, %17 : vector<8x128xi32>
    %cst_13 = arith.constant 0.000000e+00 : f32
    %19 = vector.broadcast %cst_13 : f32 to vector<8x128xf32>
    %20 = arith.select %18, %15, %19 : vector<8x128xi1>, vector<8x128xf32>
    %21 = arith.mulf %20, %20 : vector<8x128xf32>
    %cst_14 = arith.constant dense<0.000000e+00> : vector<8xf32>
    %22 = vector.multi_reduction <add>, %21, %cst_14 [1] : vector<8x128xf32> to vector<8xf32>
    %23 = vector.shape_cast %22 : vector<8xf32> to vector<8x1xf32>
    %cst_15 = arith.constant 3.125000e-02 : f32
    %24 = vector.broadcast %cst_15 : f32 to vector<8x1xf32>
    %25 = arith.mulf %23, %24 : vector<8x1xf32>
    %cst_16 = arith.constant 9.99999996E-13 : f32
    %26 = vector.broadcast %cst_16 : f32 to vector<8x1xf32>
    %27 = arith.addf %25, %26 : vector<8x1xf32>
    %28 = math.rsqrt %27 : vector<8x1xf32>
    %29 = vector.broadcast %28 : vector<8x1xf32> to vector<8x128xf32>
    %30 = arith.mulf %20, %29 : vector<8x128xf32>
    %31 = vector.broadcast %8 : vector<1x128xf32> to vector<8x128xf32>
    %32 = arith.mulf %30, %31 : vector<8x128xf32>
    %33 = vector.broadcast %9 : vector<1x128xf32> to vector<8x128xf32>
    %34 = arith.addf %32, %33 : vector<8x128xf32>
    %c0_17 = arith.constant 0 : index
    %c0_18 = arith.constant 0 : index
    %35 = vector.load %arg7[%c0_17, %c0_18] : memref<8x128xf32, #tpu.memory_space<vmem>>, vector<8x128xf32>
    tpu.vector_store %arg7[%c0_17, %c0_18], %34 {strides = array<i32>} : memref<8x128xf32, #tpu.memory_space<vmem>>, vector<8x128xf32>,
    return
  }
  func.func @transform_0(%arg0: i32) -> (i32, i32) {
    %c0_i32 = arith.constant 0 : i32
    %c0_i32_0 = arith.constant 0 : i32
    return %arg0, %c0_i32 : i32, i32
  }
  func.func @transform_1(%arg0: i32) -> (i32, i32) {
    %c0_i32 = arith.constant 0 : i32
    %c0_i32_0 = arith.constant 0 : i32
    return %arg0, %c0_i32 : i32, i32
  }
  func.func @transform_2(%arg0: i32) -> (i32, i32) {
    %c0_i32 = arith.constant 0 : i32
    %c0_i32_0 = arith.constant 0 : i32
    %c0_i32_1 = arith.constant 0 : i32
    return %c0_i32, %c0_i32_0 : i32, i32
  }
  func.func @transform_3(%arg0: i32) -> (i32, i32) {
    %c0_i32 = arith.constant 0 : i32
    %c0_i32_0 = arith.constant 0 : i32
    %c0_i32_1 = arith.constant 0 : i32
    return %c0_i32, %c0_i32_0 : i32, i32
  }
  func.func @transform_4(%arg0: i32) -> (i32, i32) {
    %c0_i32 = arith.constant 0 : i32
    %c0_i32_0 = arith.constant 0 : i32
    %c0_i32_1 = arith.constant 0 : i32
    return %c0_i32, %c0_i32_0 : i32, i32
  }
  func.func @transform_5(%arg0: i32) -> (i32, i32) {
    %c0_i32 = arith.constant 0 : i32
    %c0_i32_0 = arith.constant 0 : i32
    %c0_i32_1 = arith.constant 0 : i32
    return %c0_i32, %c0_i32_0 : i32, i32
  }
  func.func @transform_6(%arg0: i32) -> (i32, i32) {
    %c0_i32 = arith.constant 0 : i32
    %c0_i32_0 = arith.constant 0 : i32
    return %arg0, %c0_i32 : i32, i32
  }
}

</mosaic_0001>

<bundles_post_ra>
// kernel: ilp_transformer_self_output.1
= control target key start
LH: loop header
LB: loop body
LE: loop exit
PB: predicated region body
PF: predicated region fallthrough
CT: control target
= control target key end

     0   :  { %s591_s21 = smov 0   ;;  %s652_s0 = inlined_call_operand.vmem [shape: bf16[16,128], index: 0, kind: input, shape index: {}]   ;;  %s653_s1 = inlined_call_operand.vmem [shape: f32[16,128], index: 1, kind: input, shape index: {}]   ;;  %s654_s2 = inlined_call_operand.vmem [shape: bf16[128,128], index: 2, kind: input, shape index: {}]   ;;  %s655_s3 = inlined_call_operand.vmem [shape: f32[1,128], index: 3, kind: input, shape index: {}]   ;;  %s656_s4 = inlined_call_operand.vmem [shape: f32[1,128], index: 4, kind: input, shape index: {}]   ;;  %s657_s5 = inlined_call_operand.vmem [shape: f32[1,128], index: 5, kind: input, shape index: {}]   ;;  %s658_s6 = inlined_call_operand.vmem [shape: f32[16,128], index: 6, kind: output, shape index: {}]  }
   0x1 LB: > { %s476_s22 = sadd.s32 4294967295, %s552_s21   ;;  %p480_p0 = scmp.ge.s32.totalorder %s552_s21, 1  ;;  %s552_s21 = sphi %s591_s21, %s16_s21  }
   0x2   : > { %p220_p1 = scmp.lt.s32.totalorder %s552_s21, 3 }
   0x4   : > { %p221_p2 = pnand %p480_p0, %p220_p1 }
   0x5   : > { %v536_v0 = vld [vmem:[%s654_s2] sm:$0xff] (!%p221_p2)   ;;  %v554_v1 = vmov (!%p221_p2), 0.0   ;;  %v537_v2 = vld [vmem:[%s654_s2 + $0x8] sm:$0xff] (!%p221_p2)   ;;  %vm555_vm0 = vmmov (!%p221_p2), 0   ;;  %v538_v3 = vld [vmem:[%s654_s2 + $0x10] sm:$0xff] (!%p221_p2)   ;;  %p252_p3 = scmp.lt.s32.totalorder (!%p221_p2), %s476_s22, 1  ;;  %v385_v18 = vlaneseq (!%p221_p2) }
   0x6   : > { %224 = sbr.rel (%p221_p2) target bundleno = 567 (0x237), region = 44  ;;  %506 = vmatprep.subr.bf16.mxu0 (!%p221_p2), %v554_v1  ;;  %522 = vmatprep.mubr.msk.bf16.mxu0 (!%p221_p2), %vm555_vm0, %v554_v1  ;;  %v539_v4 = vld [vmem:[%s654_s2 + $0x18] sm:$0xff] (!%p221_p2)   ;;  %v540_v5 = vld [vmem:[%s654_s2 + $0x20] sm:$0xff] (!%p221_p2)   ;;  %v541_v6 = vld [vmem:[%s654_s2 + $0x28] sm:$0xff] (!%p221_p2)  }
   0x7   : > { %507 = vmatpush3.bf16.msra.mxu0 (!%p221_p2), %v536_v0  ;;  %v542_v7 = vld [vmem:[%s654_s2 + $0x30] sm:$0xff] (!%p221_p2)   ;;  %v543_v8 = vld [vmem:[%s654_s2 + $0x38] sm:$0xff] (!%p221_p2)   ;;  %v484_v10 = vld [vmem:[%s655_s3] ss:$0 sm:$0xff] (!%p221_p2)  ;;  %v386_v19 = vand.u32 (!%p221_p2), 127, %v385_v18 }
   0x8   : > { %508 = vmatprep.subr.bf16.mxu0 (!%p221_p2), %v554_v1  ;;  %v493_v29 = vld [vmem:[%s656_s4] ss:$0 sm:$0xff] (!%p221_p2) }
   0x9   : > { %vm387_vm1 = vcmp.lt.s32.totalorder (!%p221_p2), %v386_v19, 32  ;;  %v494_v31 = vld [vmem:[%s657_s5] ss:$0 sm:$0xff] (!%p221_p2) }
   0xb   : > { %509 = vmatpush3.bf16.msra.mxu0 (!%p221_p2), %v537_v2 }
   0xc   : > { %510 = vmatprep.subr.bf16.mxu0 (!%p221_p2), %v554_v1 }
   0xd   : > { %s660_s22 = smov (!%p252_p3, %s476_s22), 1 }
   0xe   : > { %s481_s13 = sshll.u32 %s660_s22, 2  ;;  %s482_s19 = sshll.u32 %s660_s22, 3 }
   0xf   : > { %511 = vmatpush3.bf16.msra.mxu0 %v538_v3  ;;  %s255_s18 = scalar_lea.vmem %s652_s0, %s481_s13  ;;  %s259_s24 = scalar_lea.vmem %s653_s1, %s482_s19 }
  0x10   : > { %512 = vmatprep.subr.bf16.mxu0 %v554_v1  ;;  %v265_v9 = vld [vmem:[%s255_s18] sm:$0xf]  ;;  %s263_s9 = scalar_lea.vmem %s658_s6, %s482_s19 }
  0x11   : > { %v377_v12 = vld [vmem:[%s259_s24] sm:$0xff] }
  0x13   : > { %513 = vmatpush3.bf16.msra.mxu0 %v539_v4 }
  0x14   : > { %514 = vmatprep.subr.bf16.mxu0 %v554_v1 }
  0x17   : > { %515 = vmatpush3.bf16.msra.mxu0 %v540_v5 }
  0x18   : > { %516 = vmatprep.subr.bf16.mxu0 %v554_v1 }
  0x1b   : > { %517 = vmatpush3.bf16.msra.mxu0 %v541_v6 }
  0x1c   : > { %518 = vmatprep.subr.bf16.mxu0 %v554_v1 }
  0x1f   : > { %519 = vmatpush3.bf16.msra.mxu0 %v542_v7 }
  0x20   : > { %520 = vmatprep.subr.bf16.mxu0 %v554_v1 }
  0x23   : > { %521 = vmatpush3.bf16.msra.mxu0 %v543_v8 }
  0x26   : > { %523 = vmatmul.mubr.bf16.vlgmr.msra.gmra.mrb[0].mxu0 %v265_v9 }
  0xf9   : > { %v371_v11 = vpop.f32.mrb[0].mxu0 }
  0xfa   : > { %v372_v13 = vadd.f32 %v484_v10, %v371_v11  ;;  %v524_v14 = vpop.f32.mrb[1].mxu0 }
  0xfb   : > { %v374_v15 = vpop.f32.mrb[2].mxu0 }
  0xfc   : > { %v525_v16 = vpop.f32.mrb[3].mxu0  ;;  %v378_v17 = vadd.f32 %v377_v12, %v372_v13 }
  0xfe   : > { %381 = vadd.xlane.f32.xlu0 %v378_v17 }
 0x18b   : > { %v382_v20 = vpop.xlane.xlu0 %381 }
 0x18c   : > { %v383_v21 = vmul.f32 0.03125, %v382_v20 }
 0x18e   : > { %v384_v22 = vsub.f32 %v378_v17, %v383_v21 }
 0x190   : > { %v388_v23 = vsel %vm387_vm1, %v384_v22, 0.0 }
 0x191   : > { %v389_v24 = vmul.f32 %v388_v23, %v388_v23 }
 0x193   : > { %390 = vadd.xlane.f32.xlu0 %v389_v24 }
 0x220   : > { %v391_v25 = vpop.xlane.xlu0 %390 }
 0x221   : > { %v392_v26 = vmul.f32 0.03125, %v391_v25 }
 0x223   : > { %v393_v27 = vadd.f32 1e-12, %v392_v26 }
 0x225   : > { %544 = vrsqrt.f32 %v393_v27 }
 0x22f   : > { %v545_v28 = vpop.eup %544 }
 0x230   : > { %v395_v30 = vmul.f32 %v545_v28, %v388_v23 }
 0x232   : > { %v402_v32 = vmul.f32 %v493_v29, %v395_v30 }
 0x234   : > { %v409_v33 = vadd.f32 %v494_v31, %v402_v32 }
 0x236   : > { %410 = vst [vmem:[%s263_s9] sm:$0xff] %v409_v33 }
 0x237 PF: > { %s16_s21 = sadd.s32 1, %s552_s21  }
 0x238   : > { %p13_p4 = scmp.ge.s32.totalorder %s16_s21, 4  }
 0x23a   :  { %15 = sbr.rel (!%p13_p4) target bundleno = 1 (0x1), region = 77 }

</bundles_post_ra>
